<compile_context>
chip_gen: v5e
topology: v5e:2x2
jax: 0.10.0
libtpu: 0.0.40
codegen_flags: <defaults>
</compile_context>

<pallas_src>
import math
import functools

import jax
import jax.numpy as jnp
from jax import lax
from jax.experimental import pallas as pl
from jax.experimental.pallas import tpu as pltpu

_NEG_INF = -1e30  # finite: exp(-1e30 - m) == 0.0, never NaN (even for fully masked/padded rows)


# ----------------------------------------------------------------------------
# Small helpers
# ----------------------------------------------------------------------------
def _round_up(x, m):
    return (x + m - 1) // m * m


def _pad_axis(x, axis, target):
    pad = target - x.shape[axis]
    if pad == 0:
        return x
    widths = [(0, 0)] * x.ndim
    widths[axis] = (0, pad)
    return jnp.pad(x, widths)


def _vmem_capacity_bytes():
    try:
        info = pltpu.get_tpu_info()
        cap = getattr(info, "vmem_capacity_bytes", None)
        if cap:
            return int(cap)
    except Exception:
        pass
    return 64 << 20  # conservative default (v7x per-TensorCore VMEM)


def _vmem_limit_bytes():
    # Raise the default scoped-VMEM limit but leave headroom for double buffering.
    return int(min(_vmem_capacity_bytes() * 3 // 4, 96 << 20))


def _compiler_params(dim_sem):
    return pltpu.CompilerParams(dimension_semantics=dim_sem,
                                vmem_limit_bytes=_vmem_limit_bytes())


def _choose_attn_tiles(T):
    # At bf16 the double-buffered working set at (512, 512) is ~1-2 MiB, far from
    # any generation's VMEM limit, so the same tiles are used on v5e/v6e/v7x.
    tq_cfg, tk_cfg = 512, 512
    t_p2 = pl.next_power_of_2(max(int(T), 8))   # clip for small sequences
    return min(tq_cfg, t_p2), min(tk_cfg, t_p2)


# ----------------------------------------------------------------------------
# Tiled linear layer: y = x @ W_t (+ b), bf16 MXU operands, f32 accumulation
# ----------------------------------------------------------------------------
def _matmul_kernel(x_ref, w_ref, o_ref, acc_ref):
    @pl.when(pl.program_id(2) == 0)
    def _init():
        acc_ref[...] = jnp.zeros_like(acc_ref)

    acc_ref[...] += jnp.dot(x_ref[...], w_ref[...],
                            preferred_element_type=jnp.float32)

    @pl.when(pl.program_id(2) == pl.num_programs(2) - 1)
    def _finalize():
        o_ref[...] = acc_ref[...].astype(o_ref.dtype)


def _matmul_bias_kernel(x_ref, w_ref, b_ref, o_ref, acc_ref):
    @pl.when(pl.program_id(2) == 0)
    def _init():
        acc_ref[...] = jnp.zeros_like(acc_ref)

    acc_ref[...] += jnp.dot(x_ref[...], w_ref[...],
                            preferred_element_type=jnp.float32)

    @pl.when(pl.program_id(2) == pl.num_programs(2) - 1)
    def _finalize():
        o_ref[...] = (acc_ref[...] + b_ref[...]).astype(o_ref.dtype)


def linear(x2d, w_t, bias=None, *, out_dtype=None, tm_cfg=512, tn_cfg=512, tk_cfg=512):
    """x2d: (M, K), w_t: (K, N), bias: (N,) or None -> (M, N) in out_dtype."""
    M, K = x2d.shape
    N = w_t.shape[1]
    if out_dtype is None:
        out_dtype = x2d.dtype

    # Cast MXU operands to bf16 once here (not per tile in-kernel): halves DMA,
    # halves per-block VMEM, removes inner-loop VPU casts.  Accumulation is f32.
    x2d = x2d.astype(jnp.bfloat16)
    w_t = w_t.astype(jnp.bfloat16)

    tm = min(tm_cfg, _round_up(M, 8))
    tn = min(tn_cfg, _round_up(N, 128))
    tk = min(tk_cfg, _round_up(K, 128))
    M_pad, N_pad, K_pad = _round_up(M, tm), _round_up(N, tn), _round_up(K, tk)

    xp = _pad_axis(_pad_axis(x2d, 0, M_pad), 1, K_pad)
    wp = _pad_axis(_pad_axis(w_t, 0, K_pad), 1, N_pad)

    grid = (M_pad // tm, N_pad // tn, K_pad // tk)
    x_spec = pl.BlockSpec((tm, tk), lambda i, j, k: (i, k))
    w_spec = pl.BlockSpec((tk, tn), lambda i, j, k: (k, j))
    o_spec = pl.BlockSpec((tm, tn), lambda i, j, k: (i, j))
    scratch = [pltpu.VMEM((tm, tn), jnp.float32)]
    cp = _compiler_params(("parallel", "parallel", "arbitrary"))
    out_shape = jax.ShapeDtypeStruct((M_pad, N_pad), out_dtype)

    if bias is None:
        out = pl.pallas_call(
            _matmul_kernel, out_shape=out_shape, grid=grid,
            in_specs=[x_spec, w_spec], out_specs=o_spec,
            scratch_shapes=scratch, compiler_params=cp,
        )(xp, wp)
    else:
        bp = _pad_axis(bias.astype(jnp.float32).reshape(1, N), 1, N_pad)
        b_spec = pl.BlockSpec((1, tn), lambda i, j, k: (0, j))
        out = pl.pallas_call(
            _matmul_bias_kernel, out_shape=out_shape, grid=grid,
            in_specs=[x_spec, w_spec, b_spec], out_specs=o_spec,
            scratch_shapes=scratch, compiler_params=cp,
        )(xp, wp, bp)
    return out[:M, :N]


# ----------------------------------------------------------------------------
# Flash-attention kernel (causal), grid = (B*H, num_q_blocks, num_kv_blocks)
# ----------------------------------------------------------------------------
def _flash_attn_kernel(q_ref, k_ref, v_ref, o_ref, m_sc, l_sc, acc_sc, *,
                       scale, tq, tk, whole_kv):
    qi = pl.program_id(1)
    ki = pl.program_id(2)

    @pl.when(ki == 0)
    def _init():
        m_sc[...] = jnp.full_like(m_sc, _NEG_INF)
        l_sc[...] = jnp.zeros_like(l_sc)
        acc_sc[...] = jnp.zeros_like(acc_sc)

    q_start = qi * tq
    k_start = ki * tk

    # Skip KV blocks that lie entirely above the causal diagonal (~2x fewer FLOPs).
    @pl.when(k_start <= q_start + (tq - 1))
    def _compute():
        # Fold 1/sqrt(head_dim) into q: O(tq*D) multiplies instead of O(tq*tk).
        q = (q_ref[...].astype(jnp.float32) * scale).astype(jnp.bfloat16)  # (tq, Dp)
        if whole_kv:
            # K/V for this head are fully resident; slice the current kv block.
            off = pl.multiple_of(ki * tk, tk)
            k = k_ref[pl.ds(off, tk), :]                                    # (tk, Dp)
            v = v_ref[pl.ds(off, tk), :]
        else:
            k = k_ref[...]
            v = v_ref[...]
        # 'nt' matmul: contract head dim of q with head dim of k (no K transpose).
        s = lax.dot_general(q, k, (((1,), (1,)), ((), ())),
                            preferred_element_type=jnp.float32)             # (tq, tk)

        row = q_start + lax.broadcasted_iota(jnp.int32, (tq, tk), 0)
        col = k_start + lax.broadcasted_iota(jnp.int32, (tq, tk), 1)
        s = jnp.where(col <= row, s, _NEG_INF)                              # causal mask

        m_prev = m_sc[...]
        m_new = jnp.maximum(m_prev, jnp.max(s, axis=-1, keepdims=True))
        alpha = jnp.exp(m_prev - m_new)
        p = jnp.exp(s - m_new)                                              # f32 softmax math
        l_sc[...] = alpha * l_sc[...] + jnp.sum(p, axis=-1, keepdims=True)
        pv = jnp.dot(p.astype(jnp.bfloat16), v,
                     preferred_element_type=jnp.float32)                    # (tq, Dp)
        acc_sc[...] = alpha * acc_sc[...] + pv
        m_sc[...] = m_new

    @pl.when(ki == pl.num_programs(2) - 1)
    def _finalize():
        inv = pl.reciprocal(l_sc[...], approx=True)   # EUP slot, deferred to finalize
        o_ref[...] = (acc_sc[...] * inv).astype(o_ref.dtype)


def causal_attention(q, k, v, *, tq=None, tk=None, force_tiled_kv=False):
    """q, k, v: (B*H, T, head_dim) -> (B*H, T, head_dim), causal softmax attention (bf16 out)."""
    BH, T, D = q.shape
    scale = 1.0 / math.sqrt(D)          # torch SDPA default scale = 1/sqrt(head_dim)

    if tq is None or tk is None:
        tq_d, tk_d = _choose_attn_tiles(T)
        tq = tq if tq is not None else tq_d
        tk = tk if tk is not None else tk_d

    T_pad = _round_up(T, tq * tk // math.gcd(tq, tk))   # both tq and tk divide T_pad
    D_pad = _round_up(D, 128)           # lane-dense blocks -> unmasked stores, full MXU lanes

    # bf16 operands (cast once here); softmax/accumulation stay f32 in scratch.
    q = q.astype(jnp.bfloat16)
    k = k.astype(jnp.bfloat16)
    v = v.astype(jnp.bfloat16)

    qp = _pad_axis(_pad_axis(q, 1, T_pad), 2, D_pad)
    kp = _pad_axis(_pad_axis(k, 1, T_pad), 2, D_pad)
    vp = _pad_axis(_pad_axis(v, 1, T_pad), 2, D_pad)

    # Whole-KV path: K+V for one head resident in VMEM, DMA'd once per head
    # (instead of once per q-block).  Budget includes double buffering, bf16.
    kv_resident_bytes = 2 * 2 * 2 * T_pad * D_pad
    whole_kv = (not force_tiled_kv) and kv_resident_bytes <= _vmem_limit_bytes() // 3

    grid = (BH, T_pad // tq, T_pad // tk)
    q_spec = pl.BlockSpec((None, tq, D_pad), lambda b, qi, ki: (b, qi, 0))
    o_spec = pl.BlockSpec((None, tq, D_pad), lambda b, qi, ki: (b, qi, 0))
    if whole_kv:
        kv_spec = pl.BlockSpec((None, T_pad, D_pad), lambda b, qi, ki: (b, 0, 0))
    else:
        # Clamp the kv block index to the last causally-needed block so that
        # above-diagonal grid steps revisit the already-resident block and the
        # pipeline issues no new DMA (the pl.when guard still skips the compute).
        def _kv_index(b, qi, ki):
            last_needed = (qi * tq + tq - 1) // tk
            return (b, jnp.minimum(ki, last_needed), 0)
        kv_spec = pl.BlockSpec((None, tk, D_pad), _kv_index)

    kern = functools.partial(_flash_attn_kernel, scale=scale, tq=tq, tk=tk,
                             whole_kv=whole_kv)
    out = pl.pallas_call(
        kern,
        out_shape=jax.ShapeDtypeStruct((BH, T_pad, D_pad), jnp.bfloat16),
        grid=grid,
        in_specs=[q_spec, kv_spec, kv_spec],
        out_specs=o_spec,
        scratch_shapes=[pltpu.VMEM((tq, 1), jnp.float32),       # running max
                        pltpu.VMEM((tq, 1), jnp.float32),       # running sum
                        pltpu.VMEM((tq, D_pad), jnp.float32)],  # output accumulator
        compiler_params=_compiler_params(("parallel", "parallel", "arbitrary")),
    )(qp, kp, vp)
    return out[:, :T, :D]


# ----------------------------------------------------------------------------
# Full forward pass (mirrors MHAPyTorchScaledDotProduct.forward, eval mode)
# ----------------------------------------------------------------------------
def mha_forward(x, w_qkv, w_proj, b_proj, num_heads, *, force_tiled_kv=False):
    B, T, d_in = x.shape
    three_d_out = w_qkv.shape[0]
    d_out = three_d_out // 3
    head_dim = d_out // num_heads

    # qkv = self.qkv(x)   (qkv_bias=False); bf16 activations out -> half the HBM
    # traffic through the layout shuffles and into the attention kernel.
    qkv = linear(x.reshape(B * T, d_in), w_qkv.T, bias=None, out_dtype=jnp.bfloat16)

    # view(B, T, 3, H, Dh).permute(2, 0, 3, 1, 4)
    # TODO(synk): fuse these layout shuffles into the attention BlockSpec index_maps
    # (only directly expressible when head_dim % 128 == 0 due to the (8,128) rule).
    qkv = qkv.reshape(B, T, 3, num_heads, head_dim)
    qkv = jnp.transpose(qkv, (2, 0, 3, 1, 4))          # (3, B, H, T, head_dim)
    q, k, v = qkv[0], qkv[1], qkv[2]
    q = q.reshape(B * num_heads, T, head_dim)
    k = k.reshape(B * num_heads, T, head_dim)
    v = v.reshape(B * num_heads, T, head_dim)

    # scaled_dot_product_attention(..., is_causal=True), dropout_p=0.0 (eval mode)
    ctx = causal_attention(q, k, v, force_tiled_kv=force_tiled_kv)   # (B*H, T, head_dim), bf16

    # transpose(1, 2).contiguous().view(B, T, d_out)
    ctx = ctx.reshape(B, num_heads, T, head_dim)
    ctx = jnp.transpose(ctx, (0, 2, 1, 3)).reshape(B * T, d_out)

    # context_vec = self.proj(context_vec); final output back in x.dtype (f32).
    out = linear(ctx, w_proj.T, bias=b_proj, out_dtype=x.dtype)
    return out.reshape(B, T, d_out)


# ----------------------------------------------------------------------------
# Pure-JAX references (for correctness checks against the Pallas kernels)
# ----------------------------------------------------------------------------
def mha_reference(x, w_qkv, w_proj, b_proj, num_heads):
    B, T, d_in = x.shape
    d_out = w_qkv.shape[0] // 3
    head_dim = d_out // num_heads
    qkv = x @ w_qkv.T
    qkv = qkv.reshape(B, T, 3, num_heads, head_dim)
    qkv = jnp.transpose(qkv, (2, 0, 3, 1, 4))
    q, k, v = qkv[0], qkv[1], qkv[2]
    s = jnp.einsum("bhqd,bhkd->bhqk", q, k) / math.sqrt(head_dim)
    mask = jnp.tril(jnp.ones((T, T), dtype=bool))
    s = jnp.where(mask, s, -jnp.inf)
    p = jax.nn.softmax(s, axis=-1)
    ctx = jnp.einsum("bhqk,bhkd->bhqd", p, v)
    ctx = jnp.transpose(ctx, (0, 2, 1, 3)).reshape(B, T, d_out)
    return ctx @ w_proj.T + b_proj


def attention_reference(q, k, v):
    BH, T, D = q.shape
    qf, kf, vf = (a.astype(jnp.float32) for a in (q, k, v))
    s = jnp.einsum("bqd,bkd->bqk", qf, kf) / math.sqrt(D)
    mask = jnp.tril(jnp.ones((T, T), dtype=bool))
    s = jnp.where(mask, s, -jnp.inf)
    p = jax.nn.softmax(s, axis=-1)
    return jnp.einsum("bqk,bkd->bqd", p, vf)


if __name__ == "__main__":
    # Module hyper-parameters (small, consistent with the forward pass)
    B, T = 2, 8
    d_in, d_out = 32, 32
    num_heads = 4
    context_length = T  # torch module uses it only to size its mask buffer; unused here.

    key = jax.random.PRNGKey(0)
    kx, kq, kp, kb, ka = jax.random.split(key, 5)

    # Deterministic parameter init (PyTorch nn.Linear-style uniform bounds).
    bound_qkv = 1.0 / math.sqrt(d_in)
    bound_proj = 1.0 / math.sqrt(d_out)
    w_qkv = jax.random.uniform(kq, (3 * d_out, d_in), jnp.float32,
                               -bound_qkv, bound_qkv)          # qkv_bias=False
    w_proj = jax.random.uniform(kp, (d_out, d_out), jnp.float32,
                                -bound_proj, bound_proj)
    b_proj = jax.random.uniform(kb, (d_out,), jnp.float32,
                                -bound_proj, bound_proj)

    x = jax.random.normal(kx, (B, T, d_in), jnp.float32)

    out = jax.block_until_ready(mha_forward(x, w_qkv, w_proj, b_proj, num_heads))
    ref = mha_reference(x, w_qkv, w_proj, b_proj, num_heads)

    assert out.shape == (B, T, d_out), out.shape
    # bf16 MXU operands / bf16 activations (with f32 accumulation and f32 softmax)
    # -> tolerance looser than a pure-f32 path would need.
    max_err = float(jnp.max(jnp.abs(out - ref)))
    assert jnp.allclose(out, ref, atol=3e-2, rtol=3e-2), max_err

    # Exercise BOTH attention KV paths (resident whole-KV and tiled + clamped
    # index_map) with forced small tiles so multiple KV blocks, the causal
    # compute skip, and the clamp logic all get covered.
    BH2, T2, D2 = 2, 64, 32
    qkv2 = jax.random.normal(ka, (3, BH2, T2, D2), jnp.float32).astype(jnp.bfloat16)
    q2, k2, v2 = qkv2[0], qkv2[1], qkv2[2]
    ref2 = attention_reference(q2, k2, v2)
    for force_tiled in (False, True):
        out2 = jax.block_until_ready(
            causal_attention(q2, k2, v2, tq=16, tk=16, force_tiled_kv=force_tiled))
        err2 = float(jnp.max(jnp.abs(out2.astype(jnp.float32) - ref2)))
        assert jnp.allclose(out2.astype(jnp.float32), ref2,
                            atol=3e-2, rtol=3e-2), (force_tiled, err2)

    print("KERNEL_OK")
</pallas_src>

<mosaic_0001>
module attributes {stable_mosaic.version = 11 : i64} {
  func.func @_matmul_kernel(%arg0: i32, %arg1: i32, %arg2: i32, %arg3: memref<16x128xbf16, #tpu.memory_space<vmem>>, %arg4: memref<128x128xbf16, #tpu.memory_space<vmem>>, %arg5: memref<16x128xbf16, #tpu.memory_space<vmem>>, %arg6: memref<16x128xf32, #tpu.memory_space<vmem>>) attributes {dimension_semantics = [#tpu.dimension_semantics<parallel>, #tpu.dimension_semantics<parallel>, #tpu.dimension_semantics<arbitrary>], iteration_bounds = array<i64: 1, 1, 1>, scalar_prefetch = 0 : i64, scratch_operands = 1 : i64, tpu.core_type = #tpu.core_type<tc>, window_params = [{transform_indices = @transform_0, window_bounds = array<i64: 16, 128>}, {transform_indices = @transform_1, window_bounds = array<i64: 128, 128>}, {transform_indices = @transform_2, window_bounds = array<i64: 16, 128>}]} {
    %c0_i32 = arith.constant 0 : i32
    %0 = arith.cmpi eq, %arg2, %c0_i32 : i32
    %1 = arith.extui %0 : i1 to i32
    %c0_i32_0 = arith.constant 0 : i32
    %2 = arith.cmpi ne, %1, %c0_i32_0 : i32
    scf.if %2 {
      %cst_10 = arith.constant 0.000000e+00 : f32
      %12 = vector.broadcast %cst_10 : f32 to vector<16x128xf32>
      %c0_11 = arith.constant 0 : index
      %c0_12 = arith.constant 0 : index
      %13 = vector.load %arg6[%c0_11, %c0_12] : memref<16x128xf32, #tpu.memory_space<vmem>>, vector<16x128xf32>
      tpu.vector_store %arg6[%c0_11, %c0_12], %12 {strides = array<i32>} : memref<16x128xf32, #tpu.memory_space<vmem>>, vector<16x128xf32>,
    } else {
    }
    %c0 = arith.constant 0 : index
    %c0_1 = arith.constant 0 : index
    %3 = vector.load %arg6[%c0, %c0_1] : memref<16x128xf32, #tpu.memory_space<vmem>>, vector<16x128xf32>
    %c0_2 = arith.constant 0 : index
    %c0_3 = arith.constant 0 : index
    %4 = vector.load %arg3[%c0_2, %c0_3] : memref<16x128xbf16, #tpu.memory_space<vmem>>, vector<16x128xbf16>
    %c0_4 = arith.constant 0 : index
    %c0_5 = arith.constant 0 : index
    %5 = vector.load %arg4[%c0_4, %c0_5] : memref<128x128xbf16, #tpu.memory_space<vmem>>, vector<128x128xbf16>
    %cst = arith.constant dense<0.000000e+00> : vector<16x128xf32>
    %6 = tpu.matmul %4, %5, %cst {dimension_numbers = #tpu.dot_dimension_numbers<[1], [0], [0], [1], [0, 0, 1, 1], [], []>} : vector<16x128xbf16>, vector<128x128xbf16>, vector<16x128xf32> -> vector<16x128xf32>
    %7 = arith.addf %3, %6 : vector<16x128xf32>
    %c0_6 = arith.constant 0 : index
    %c0_7 = arith.constant 0 : index
    %8 = vector.load %arg6[%c0_6, %c0_7] : memref<16x128xf32, #tpu.memory_space<vmem>>, vector<16x128xf32>
    tpu.vector_store %arg6[%c0_6, %c0_7], %7 {strides = array<i32>} : memref<16x128xf32, #tpu.memory_space<vmem>>, vector<16x128xf32>,
    %c0_i32_8 = arith.constant 0 : i32
    %9 = arith.cmpi eq, %arg2, %c0_i32_8 : i32
    %10 = arith.extui %9 : i1 to i32
    %c0_i32_9 = arith.constant 0 : i32
    %11 = arith.cmpi ne, %10, %c0_i32_9 : i32
    scf.if %11 {
      %c0_10 = arith.constant 0 : index
      %c0_11 = arith.constant 0 : index
      %12 = vector.load %arg6[%c0_10, %c0_11] : memref<16x128xf32, #tpu.memory_space<vmem>>, vector<16x128xf32>
      %13 = arith.truncf %12 : vector<16x128xf32> to vector<16x128xbf16>
      %c0_12 = arith.constant 0 : index
      %c0_13 = arith.constant 0 : index
      %14 = vector.load %arg5[%c0_12, %c0_13] : memref<16x128xbf16, #tpu.memory_space<vmem>>, vector<16x128xbf16>
      tpu.vector_store %arg5[%c0_12, %c0_13], %13 {strides = array<i32>} : memref<16x128xbf16, #tpu.memory_space<vmem>>, vector<16x128xbf16>,
    } else {
    }
    return
  }
  func.func @transform_0(%arg0: i32, %arg1: i32, %arg2: i32) -> (i32, i32) {
    %c0_i32 = arith.constant 0 : i32
    return %arg0, %arg2 : i32, i32
  }
  func.func @transform_1(%arg0: i32, %arg1: i32, %arg2: i32) -> (i32, i32) {
    %c0_i32 = arith.constant 0 : i32
    return %arg2, %arg1 : i32, i32
  }
  func.func @transform_2(%arg0: i32, %arg1: i32, %arg2: i32) -> (i32, i32) {
    %c0_i32 = arith.constant 0 : i32
    return %arg0, %arg1 : i32, i32
  }
}

</mosaic_0001>

<bundles_post_ra>
// kernel: tpu_custom_call.1
= control target key start
LH: loop header
LB: loop body
LE: loop exit
PB: predicated region body
PF: predicated region fallthrough
CT: control target
= control target key end

     0   :  { %7 = vsyncpa [#allocation4], 0  ;;  %s342_s0 = inlined_call_operand.hbm [shape: bf16[16,128], index: 0, kind: input, shape index: {}]   ;;  %s343_s1 = inlined_call_operand.hbm [shape: bf16[128,128], index: 1, kind: input, shape index: {}]   ;;  %s344_s2 = inlined_call_operand.hbm [shape: bf16[16,128], index: 2, kind: output, shape index: {}]  }
   0x1   :  { %8 = vsyncpa [#allocation7], 0 }
   0x2   :  { %9 = vsyncpa [#allocation5], 0  ;;  %s14_s11 = sshll.u32 %s342_s0, 4  ;;  %s304_s12 = smov [#allocation3]   ;;  %s15_s11 = int_to_ptr.hbm [resolvable:$true] %s14_s11 }
   0x3   :  { %s16_s13 = sshll.u32 %s304_s12, 4  ;;  %s27_s16 = sshll.u32 %s343_s1, 4  ;;  %s17_s13 = int_to_ptr.vmem [resolvable:$true] %s16_s13  ;;  %s28_s16 = int_to_ptr.hbm [resolvable:$true] %s27_s16 }
   0x4   :  { %s305_s17 = smov 64   ;;  %s306_s18 = smov 4  }
   0x5   :  { %22 = dma.hbm_to_vmem [thread:$0]  %s15_s11, 128, %s17_s13, [#allocation4], %s305_s17, %s305_s17, %s306_s18  }
   0x6   :  { %s307_s19 = smov [#allocation6]  }
   0x7   :  { %s29_s20 = sshll.u32 %s307_s19, 4  ;;  %s30_s20 = int_to_ptr.vmem [resolvable:$true] %s29_s20 }
   0x8   :  { %35 = dma.hbm_to_vmem [thread:$0]  %s28_s16, 1024, %s30_s20, [#allocation7], %s305_s17, %s305_s17, %s306_s18  }
   0x9   :  { %298 = dma.done.wait [#allocation4], 128  }
   0xa   :  { %299 = vsyncadd [#allocation4], 4294967168 }
   0xb   :  { %300 = dma.done.wait [#allocation7], 1024  }
   0xc   :  { %301 = vsyncadd [#allocation7], 4294966272  ;;  %v215_v0 = vld [vmem:[#allocation6 + $0x38] sm:$0xff]  ;;  %v214_v1 = vld [vmem:[#allocation6 + $0x30] sm:$0xff]  ;;  %s308_s0 = smov [#allocation8]   ;;  %s157_s23 = sshll.u32 %s344_s2, 4  ;;  %s158_s23 = int_to_ptr.hbm [resolvable:$true] %s157_s23 }
   0xd   :  { %124 = vmatpush.bf16.msra.mxu0 %v215_v0  ;;  %v213_v2 = vld [vmem:[#allocation6 + $0x28] sm:$0xff]  ;;  %v212_v3 = vld [vmem:[#allocation6 + $0x20] sm:$0xff]  ;;  %v211_v4 = vld [vmem:[#allocation6 + $0x18] sm:$0xff]  ;;  %s155_s1 = sshll.u32 %s308_s0, 4  ;;  %s156_s1 = int_to_ptr.vmem [resolvable:$true] %s155_s1 }
   0xe   :  { %v210_v5 = vld [vmem:[#allocation6 + $0x10] sm:$0xff]  ;;  %v209_v6 = vld [vmem:[#allocation6 + $0x8] sm:$0xff]  ;;  %v208_v7 = vld [vmem:[#allocation6] sm:$0xff] }
   0xf   :  { %v207_v8 = vld [vmem:[#allocation3] sm:$0xff] }
  0x11   :  { %125 = vmatpush.bf16.msra.mxu0 %v214_v1 }
  0x15   :  { %126 = vmatpush.bf16.msra.mxu0 %v213_v2 }
  0x19   :  { %127 = vmatpush.bf16.msra.mxu0 %v212_v3 }
  0x1d   :  { %128 = vmatpush.bf16.msra.mxu0 %v211_v4 }
  0x21   :  { %129 = vmatpush.bf16.msra.mxu0 %v210_v5 }
  0x25   :  { %130 = vmatpush.bf16.msra.mxu0 %v209_v6 }
  0x29   :  { %131 = vmatpush.bf16.msra.mxu0 %v208_v7 }
  0x2c   :  { %132 = vmatmul.bf16.vlgmr.msra.gmra.mxu0 %v207_v8 }
  0xa9   :  { %v133_v9 = vpop.f32.mrf.mxu0 }
  0xb1   :  { %v135_v10 = vpop.f32.mrf.mxu0 }
  0xb2   :  { %v219_v11 = vpack.c.bf16 %v135_v10, %v133_v9 }
  0xb4   :  { %220 = vst [vmem:[#allocation8] sm:$0xff] %v219_v11  }
  0xb5   :  { %163 = dma.vmem_to_hbm [thread:$0]  %s156_s1, 128, %s158_s23, [#allocation5], %s305_s17, %s305_s17, %s306_s18  }
  0xb6   :  { %302 = dma.done.wait [#allocation5], 128  }
  0xb7   :  { %303 = vsyncadd [#allocation5], 4294967168 }
  0xb8   :  { %168 = vsyncpa [#allocation4], 1 }
  0xb9   :  { %169 = vsyncpa [#allocation7], 1 }
  0xba   :  { %170 = vsyncpa [#allocation5], 1 }

</bundles_post_ra>
